<compile_context>
chip_gen: v7x
topology: tpu7x:2x2x1
jax: 0.10.0
libtpu: 0.0.40
codegen_flags: <defaults>
</compile_context>

<pallas_src>
import functools
import math

import jax
import jax.numpy as jnp
import numpy as np
from jax.experimental import pallas as pl
from jax.experimental.pallas import tpu as pltpu

# ----------------------------- toy configuration -----------------------------
DIM = 32
N_HEAD = 4
N_LOCAL_HEADS = 2              # GQA: 2 query heads per kv head
HEAD_DIM = DIM // N_HEAD       # 8
INTERMEDIATE = 64
NORM_EPS = 1e-5
ROPE_BASE = 10000.0
BATCH = 2
SEQ = 8


# ------------------------------ fused block kernel ---------------------------
def _block_kernel(x_ref, cos_ref, sin_ref, attn_nw_ref, ffn_nw_ref,
                  wproj_ref, wo_ref, w13_ref, w2_ref, o_ref,
                  *, eps, seq, n_head, n_kv_head, head_dim, intermediate):
    f32 = jnp.float32
    bf16 = jnp.bfloat16
    group = n_head // n_kv_head
    qw = n_head * head_dim
    kvw = n_kv_head * head_dim
    # column offsets inside the fused projection [ q | k | v | q@P | k@P ]
    k_off = qw
    v_off = qw + kvw
    qr_off = qw + 2 * kvw
    kr_off = 2 * qw + 2 * kvw

    x = x_ref[...].astype(f32)                                  # (S, D)

    def rmsnorm(v, w_ref):
        ms = jnp.mean(v * v, axis=-1, keepdims=True)
        return v * jax.lax.rsqrt(ms + eps) * w_ref[...].astype(f32)

    # ---------------- attention branch ----------------
    xn = rmsnorm(x, attn_nw_ref)
    # One bf16 MXU matmul: [ q | k | v | q@P | k@P ]  (RoPE pair-swap columns
    # and the 1/sqrt(head_dim) query scale are pre-folded into the weight).
    proj = jnp.dot(xn.astype(bf16), wproj_ref[...],
                   preferred_element_type=f32)                  # (S, 2qw+3kvw)

    # RoPE applied once to the whole Q / K slabs (two wide VPU FMAs).
    cos = cos_ref[...].astype(f32)                              # (S, hd)
    sin = sin_ref[...].astype(f32)
    cos_q = jnp.concatenate([cos] * n_head, axis=1)             # (S, qw)
    sin_q = jnp.concatenate([sin] * n_head, axis=1)
    cos_k = cos_q[:, :kvw]                                      # (S, kvw)
    sin_k = sin_q[:, :kvw]
    q_rot = proj[:, 0:qw] * cos_q + proj[:, qr_off:qr_off + qw] * sin_q
    k_rot = proj[:, k_off:k_off + kvw] * cos_k + proj[:, kr_off:kr_off + kvw] * sin_k
    v_all = proj[:, v_off:v_off + kvw]

    # Causal (S, S) mask, built once; tiled once for the group-stacked rows.
    qi = jax.lax.broadcasted_iota(jnp.int32, (seq, seq), 0)
    ki = jax.lax.broadcasted_iota(jnp.int32, (seq, seq), 1)
    causal = ki <= qi
    causal_g = jnp.concatenate([causal] * group, axis=0)        # (group*S, S)

    # Per KV head: stack that group's query heads into one (group*S, hd) LHS
    # against the shared K/V -> denser MXU pushes, K is RoPE'd exactly once.
    o_heads = []
    for kh in range(n_kv_head):
        k_h = k_rot[:, kh * head_dim:(kh + 1) * head_dim].astype(bf16)   # (S, hd)
        v_h = v_all[:, kh * head_dim:(kh + 1) * head_dim].astype(bf16)   # (S, hd)
        h0 = kh * group
        q_stack = jnp.concatenate(
            [q_rot[:, (h0 + g) * head_dim:(h0 + g + 1) * head_dim]
             for g in range(group)], axis=0).astype(bf16)                # (g*S, hd)
        # QK^T without materializing K^T.
        s = jax.lax.dot_general(q_stack, k_h, (((1,), (1,)), ((), ())),
                                preferred_element_type=f32)              # (g*S, S)
        s = jnp.where(causal_g, s, -1e30)
        m = jnp.max(s, axis=-1, keepdims=True)
        p = jnp.exp(s - m)
        denom = jnp.sum(p, axis=-1, keepdims=True)
        p = p * pl.reciprocal(denom, approx=True)                        # EUP
        o_stack = jnp.dot(p.astype(bf16), v_h,
                          preferred_element_type=f32)                    # (g*S, hd)
        for g in range(group):
            o_heads.append(o_stack[g * seq:(g + 1) * seq, :])
    y = jnp.concatenate(o_heads, axis=-1)                                # (S, D)

    attn_out = jnp.dot(y.astype(bf16), wo_ref[...], preferred_element_type=f32)
    h = x + attn_out

    # ---------------- feed-forward branch ----------------
    hn = rmsnorm(h, ffn_nw_ref)
    # Fused gate/up projection: one lane-dense (D, 2I) bf16 matmul, value split.
    h13 = jnp.dot(hn.astype(bf16), w13_ref[...], preferred_element_type=f32)
    h1 = h13[:, :intermediate]
    h3 = h13[:, intermediate:]
    gated = (h1 * jax.nn.sigmoid(h1)) * h3        # SiLU(w1 x) * (w3 x), f32 VPU
    ffn_out = jnp.dot(gated.astype(bf16), w2_ref[...], preferred_element_type=f32)

    o_ref[...] = (h + ffn_out).astype(o_ref.dtype)


# --------------------------- one-time weight prep -----------------------------
def _rope_rotate_weight(w):
    """W_rot with (x @ W_rot)[:, 2j] = -(x @ W)[:, 2j+1], [:, 2j+1] = (x @ W)[:, 2j].

    Built by interleave/negate of the weight columns (no dense pair-swap matmul).
    """
    w_even = w[:, 0::2]
    w_odd = w[:, 1::2]
    return jnp.stack([-w_odd, w_even], axis=-1).reshape(w.shape)


def prepare_block_params(params):
    """Fold RoPE pair-swap + 1/sqrt(hd) scale into the weights, fuse QKV / W1|W3,
    and store all matmul weights in bf16. Call once at init."""
    qw = N_HEAD * HEAD_DIM
    kvw = N_LOCAL_HEADS * HEAD_DIM
    scale = 1.0 / math.sqrt(HEAD_DIM)
    wq = params['wqkv_t'][:, :qw] * scale
    wk = params['wqkv_t'][:, qw:qw + kvw]
    wv = params['wqkv_t'][:, qw + kvw:]
    w_proj = jnp.concatenate(
        [wq, wk, wv, _rope_rotate_weight(wq), _rope_rotate_weight(wk)], axis=1)
    w13 = jnp.concatenate([params['w1_t'], params['w3_t']], axis=1)
    bf16 = jnp.bfloat16
    return dict(
        attn_norm_w=params['attn_norm_w'],
        ffn_norm_w=params['ffn_norm_w'],
        w_proj=w_proj.astype(bf16),
        wo=params['wo_t'].astype(bf16),
        w13=w13.astype(bf16),
        w2=params['w2_t'].astype(bf16),
    )


# ------------------------------ wrapper / glue --------------------------------
def transformer_block(x, input_pos, freqs_cis, prepared):
    """x: (B, S, D).  input_pos is unused because kv_cache is None here."""
    del input_pos  # TODO(synk): decode-path kv_cache indexing not implemented.
    B, S, D = x.shape

    # Interleave-repeated cos/sin, only (S, head_dim) — no B / n_head tiling.
    cos = jnp.repeat(freqs_cis[..., 0], 2, axis=-1)             # (S, hd)
    sin = jnp.repeat(freqs_cis[..., 1], 2, axis=-1)

    kernel = functools.partial(
        _block_kernel, eps=NORM_EPS, seq=S, n_head=N_HEAD,
        n_kv_head=N_LOCAL_HEADS, head_dim=HEAD_DIM, intermediate=INTERMEDIATE)

    x2d = x.reshape(B * S, D)
    operands = (x2d, cos, sin,
                prepared['attn_norm_w'], prepared['ffn_norm_w'],
                prepared['w_proj'], prepared['wo'],
                prepared['w13'], prepared['w2'])

    # Batch axis as a "parallel" grid dimension (keeps both v7x TCs busy);
    # weights / tables use the same (0, 0) block every step (no re-DMA).
    x_spec = pl.BlockSpec((S, D), lambda b: (b, 0))
    in_specs = [x_spec] + [pl.BlockSpec(op.shape, lambda b: (0, 0))
                           for op in operands[1:]]

    out2d = pl.pallas_call(
        kernel,
        out_shape=jax.ShapeDtypeStruct((B * S, D), x.dtype),
        grid=(B,),
        in_specs=in_specs,
        out_specs=pl.BlockSpec((S, D), lambda b: (b, 0)),
        compiler_params=pltpu.CompilerParams(
            dimension_semantics=("parallel",),
            vmem_limit_bytes=32 * 1024 * 1024),
    )(*operands)
    return out2d.reshape(B, S, D)


# --------------------------- pure-JAX reference --------------------------------
def apply_rotary_emb(x, freqs_cis):
    xs = x.astype(jnp.float32).reshape(*x.shape[:-1], -1, 2)
    fc = freqs_cis.reshape(1, xs.shape[1], 1, xs.shape[3], 2)
    o0 = xs[..., 0] * fc[..., 0] - xs[..., 1] * fc[..., 1]
    o1 = xs[..., 1] * fc[..., 0] + xs[..., 0] * fc[..., 1]
    return jnp.stack([o0, o1], axis=-1).reshape(x.shape).astype(x.dtype)


def precompute_freqs_cis(seq_len, head_dim, base):
    freqs = 1.0 / (base ** (jnp.arange(0, head_dim, 2, dtype=jnp.float32) / head_dim))
    ang = jnp.outer(jnp.arange(seq_len, dtype=jnp.float32), freqs)
    return jnp.stack([jnp.cos(ang), jnp.sin(ang)], axis=-1)   # (S, hd//2, 2)


def init_params(key):
    ks = jax.random.split(key, 7)
    w = lambda k, shape: jax.random.normal(k, shape, jnp.float32) * 0.05
    total_head_dim = (N_HEAD + 2 * N_LOCAL_HEADS) * HEAD_DIM
    return dict(
        attn_norm_w=1.0 + 0.1 * jax.random.normal(ks[5], (1, DIM), jnp.float32),
        ffn_norm_w=1.0 + 0.1 * jax.random.normal(ks[6], (1, DIM), jnp.float32),
        wqkv_t=w(ks[0], (DIM, total_head_dim)),   # no qkv bias (has_qkv_bias=False)
        wo_t=w(ks[1], (DIM, DIM)),
        w1_t=w(ks[2], (DIM, INTERMEDIATE)),
        w3_t=w(ks[3], (DIM, INTERMEDIATE)),
        w2_t=w(ks[4], (INTERMEDIATE, DIM)),
    )


def reference_block(x, freqs_cis, params):
    B, S, D = x.shape

    def rms(v, w):
        vf = v.astype(jnp.float32)
        return vf * jax.lax.rsqrt(jnp.mean(vf * vf, -1, keepdims=True) + NORM_EPS) * w.reshape(-1)

    xn = rms(x, params['attn_norm_w'])
    qkv = xn @ params['wqkv_t']
    kv_size = N_LOCAL_HEADS * HEAD_DIM
    q = qkv[..., :D].reshape(B, S, N_HEAD, HEAD_DIM)
    k = qkv[..., D:D + kv_size].reshape(B, S, N_LOCAL_HEADS, HEAD_DIM)
    v = qkv[..., D + kv_size:].reshape(B, S, N_LOCAL_HEADS, HEAD_DIM)
    q = apply_rotary_emb(q, freqs_cis)
    k = apply_rotary_emb(k, freqs_cis)
    q, k, v = [t.transpose(0, 2, 1, 3) for t in (q, k, v)]
    rep = N_HEAD // N_LOCAL_HEADS
    k = jnp.repeat(k, rep, axis=1)
    v = jnp.repeat(v, rep, axis=1)
    s = jnp.einsum('bhqd,bhkd->bhqk', q, k) / math.sqrt(HEAD_DIM)
    mask = jnp.tril(jnp.ones((S, S), bool))
    s = jnp.where(mask, s, -jnp.inf)
    p = jax.nn.softmax(s, axis=-1)
    y = jnp.einsum('bhqk,bhkd->bhqd', p, v).transpose(0, 2, 1, 3).reshape(B, S, D)
    h = x + y @ params['wo_t']
    hn = rms(h, params['ffn_norm_w'])
    ff = (jax.nn.silu(hn @ params['w1_t']) * (hn @ params['w3_t'])) @ params['w2_t']
    return h + ff


# ---------------------------------- main ---------------------------------------
if __name__ == "__main__":
    key = jax.random.PRNGKey(0)
    pkey, xkey = jax.random.split(key)
    params = init_params(pkey)
    prepared = prepare_block_params(params)   # one-time weight fusion / bf16 cast
    x = jax.random.normal(xkey, (BATCH, SEQ, DIM), jnp.float32)
    input_pos = jnp.arange(SEQ, dtype=jnp.int32)
    freqs_cis = precompute_freqs_cis(SEQ, HEAD_DIM, ROPE_BASE)

    out = jax.block_until_ready(transformer_block(x, input_pos, freqs_cis, prepared))
    ref = jax.block_until_ready(reference_block(x, freqs_cis, params))
    # Tolerance accounts for bf16 MXU matmul inputs + EUP approx reciprocal vs
    # the f32 reference.
    np.testing.assert_allclose(np.asarray(out), np.asarray(ref), rtol=2e-2, atol=5e-3)

    print("KERNEL_OK")
</pallas_src>

<mosaic_0001>
module attributes {stable_mosaic.version = 11 : i64} {
  func.func @_block_kernel(%arg0: i32, %arg1: memref<8x32xf32, #tpu.memory_space<vmem>>, %arg2: memref<8x8xf32, #tpu.memory_space<vmem>>, %arg3: memref<8x8xf32, #tpu.memory_space<vmem>>, %arg4: memref<1x32xf32, #tpu.memory_space<vmem>>, %arg5: memref<1x32xf32, #tpu.memory_space<vmem>>, %arg6: memref<32x112xbf16, #tpu.memory_space<vmem>>, %arg7: memref<32x32xbf16, #tpu.memory_space<vmem>>, %arg8: memref<32x128xbf16, #tpu.memory_space<vmem>>, %arg9: memref<64x32xbf16, #tpu.memory_space<vmem>>, %arg10: memref<8x32xf32, #tpu.memory_space<vmem>>) attributes {dimension_semantics = [#tpu.dimension_semantics<parallel>], iteration_bounds = array<i64: 2>, scalar_prefetch = 0 : i64, scratch_operands = 0 : i64, tpu.core_type = #tpu.core_type<tc>, window_params = [{transform_indices = @transform_0, window_bounds = array<i64: 8, 32>}, {pipeline_mode = #tpu.pipeline_mode<synchronous>, transform_indices = @transform_1, window_bounds = array<i64: 8, 8>}, {pipeline_mode = #tpu.pipeline_mode<synchronous>, transform_indices = @transform_2, window_bounds = array<i64: 8, 8>}, {pipeline_mode = #tpu.pipeline_mode<synchronous>, transform_indices = @transform_3, window_bounds = array<i64: 1, 32>}, {pipeline_mode = #tpu.pipeline_mode<synchronous>, transform_indices = @transform_4, window_bounds = array<i64: 1, 32>}, {pipeline_mode = #tpu.pipeline_mode<synchronous>, transform_indices = @transform_5, window_bounds = array<i64: 32, 112>}, {pipeline_mode = #tpu.pipeline_mode<synchronous>, transform_indices = @transform_6, window_bounds = array<i64: 32, 32>}, {pipeline_mode = #tpu.pipeline_mode<synchronous>, transform_indices = @transform_7, window_bounds = array<i64: 32, 128>}, {pipeline_mode = #tpu.pipeline_mode<synchronous>, transform_indices = @transform_8, window_bounds = array<i64: 64, 32>}, {transform_indices = @transform_9, window_bounds = array<i64: 8, 32>}]} {
    %c0 = arith.constant 0 : index
    %c0_0 = arith.constant 0 : index
    %0 = vector.load %arg1[%c0, %c0_0] : memref<8x32xf32, #tpu.memory_space<vmem>>, vector<8x32xf32>
    %1 = arith.mulf %0, %0 : vector<8x32xf32>
    %cst = arith.constant dense<0.000000e+00> : vector<8xf32>
    %2 = vector.multi_reduction <add>, %1, %cst [1] : vector<8x32xf32> to vector<8xf32>
    %3 = vector.shape_cast %2 : vector<8xf32> to vector<8x1xf32>
    %cst_1 = arith.constant 3.200000e+01 : f32
    %4 = vector.broadcast %cst_1 : f32 to vector<8x1xf32>
    %5 = arith.divf %3, %4 : vector<8x1xf32>
    %cst_2 = arith.constant 9.99999974E-6 : f32
    %6 = vector.broadcast %cst_2 : f32 to vector<8x1xf32>
    %7 = arith.addf %5, %6 : vector<8x1xf32>
    %8 = math.rsqrt %7 : vector<8x1xf32>
    %9 = vector.broadcast %8 : vector<8x1xf32> to vector<8x32xf32>
    %10 = arith.mulf %0, %9 : vector<8x32xf32>
    %c0_3 = arith.constant 0 : index
    %c0_4 = arith.constant 0 : index
    %11 = vector.load %arg4[%c0_3, %c0_4] : memref<1x32xf32, #tpu.memory_space<vmem>>, vector<1x32xf32>
    %12 = vector.broadcast %11 : vector<1x32xf32> to vector<8x32xf32>
    %13 = arith.mulf %10, %12 : vector<8x32xf32>
    %14 = arith.truncf %13 : vector<8x32xf32> to vector<8x32xbf16>
    %c0_5 = arith.constant 0 : index
    %c0_6 = arith.constant 0 : index
    %15 = vector.load %arg6[%c0_5, %c0_6] : memref<32x112xbf16, #tpu.memory_space<vmem>>, vector<32x112xbf16>
    %cst_7 = arith.constant dense<0.000000e+00> : vector<8x112xf32>
    %16 = tpu.matmul %14, %15, %cst_7 {dimension_numbers = #tpu.dot_dimension_numbers<[1], [0], [0], [1], [0, 0, 1, 1], [], []>} : vector<8x32xbf16>, vector<32x112xbf16>, vector<8x112xf32> -> vector<8x112xf32>
    %c0_8 = arith.constant 0 : index
    %c0_9 = arith.constant 0 : index
    %17 = vector.load %arg2[%c0_8, %c0_9] : memref<8x8xf32, #tpu.memory_space<vmem>>, vector<8x8xf32>
    %c0_10 = arith.constant 0 : index
    %c0_11 = arith.constant 0 : index
    %18 = vector.load %arg3[%c0_10, %c0_11] : memref<8x8xf32, #tpu.memory_space<vmem>>, vector<8x8xf32>
    %19 = tpu.concatenate %17, %17, %17, %17 in 1 : vector<8x8xf32>, vector<8x8xf32>, vector<8x8xf32>, vector<8x8xf32> -> vector<8x32xf32>
    %20 = tpu.concatenate %18, %18, %18, %18 in 1 : vector<8x8xf32>, vector<8x8xf32>, vector<8x8xf32>, vector<8x8xf32> -> vector<8x32xf32>
    %21 = vector.extract_strided_slice %19 {offsets = [0, 0], sizes = [8, 16], strides = [1, 1]} : vector<8x32xf32> to vector<8x16xf32>
    %22 = vector.extract_strided_slice %20 {offsets = [0, 0], sizes = [8, 16], strides = [1, 1]} : vector<8x32xf32> to vector<8x16xf32>
    %23 = vector.extract_strided_slice %16 {offsets = [0, 0], sizes = [8, 32], strides = [1, 1]} : vector<8x112xf32> to vector<8x32xf32>
    %24 = arith.mulf %23, %19 : vector<8x32xf32>
    %25 = vector.extract_strided_slice %16 {offsets = [0, 64], sizes = [8, 32], strides = [1, 1]} : vector<8x112xf32> to vector<8x32xf32>
    %26 = arith.mulf %25, %20 : vector<8x32xf32>
    %27 = arith.addf %24, %26 : vector<8x32xf32>
    %28 = vector.extract_strided_slice %16 {offsets = [0, 32], sizes = [8, 16], strides = [1, 1]} : vector<8x112xf32> to vector<8x16xf32>
    %29 = arith.mulf %28, %21 : vector<8x16xf32>
    %30 = vector.extract_strided_slice %16 {offsets = [0, 96], sizes = [8, 16], strides = [1, 1]} : vector<8x112xf32> to vector<8x16xf32>
    %31 = arith.mulf %30, %22 : vector<8x16xf32>
    %32 = arith.addf %29, %31 : vector<8x16xf32>
    %33 = vector.extract_strided_slice %16 {offsets = [0, 48], sizes = [8, 16], strides = [1, 1]} : vector<8x112xf32> to vector<8x16xf32>
    %34 = tpu.iota {dimensions = array<i32: 0>} : vector<8x8xi32>
    %35 = tpu.iota {dimensions = array<i32: 1>} : vector<8x8xi32>
    %36 = arith.cmpi sle, %35, %34 : vector<8x8xi32>
    %37 = tpu.concatenate %36, %36 in 0 : vector<8x8xi1>, vector<8x8xi1> -> vector<16x8xi1>
    %38 = vector.extract_strided_slice %32 {offsets = [0, 0], sizes = [8, 8], strides = [1, 1]} : vector<8x16xf32> to vector<8x8xf32>
    %39 = arith.truncf %38 : vector<8x8xf32> to vector<8x8xbf16>
    %40 = vector.extract_strided_slice %33 {offsets = [0, 0], sizes = [8, 8], strides = [1, 1]} : vector<8x16xf32> to vector<8x8xf32>
    %41 = arith.truncf %40 : vector<8x8xf32> to vector<8x8xbf16>
    %42 = vector.extract_strided_slice %27 {offsets = [0, 0], sizes = [8, 8], strides = [1, 1]} : vector<8x32xf32> to vector<8x8xf32>
    %43 = vector.extract_strided_slice %27 {offsets = [0, 8], sizes = [8, 8], strides = [1, 1]} : vector<8x32xf32> to vector<8x8xf32>
    %44 = tpu.concatenate %42, %43 in 0 : vector<8x8xf32>, vector<8x8xf32> -> vector<16x8xf32>
    %45 = arith.truncf %44 : vector<16x8xf32> to vector<16x8xbf16>
    %cst_12 = arith.constant dense<0.000000e+00> : vector<16x8xf32>
    %46 = tpu.matmul %45, %39, %cst_12 {dimension_numbers = #tpu.dot_dimension_numbers<[1], [1], [0], [0], [0, 0, 1, 0], [], []>} : vector<16x8xbf16>, vector<8x8xbf16>, vector<16x8xf32> -> vector<16x8xf32>
    %cst_13 = arith.constant -1.000000e+30 : f32
    %47 = vector.broadcast %cst_13 : f32 to vector<16x8xf32>
    %48 = arith.select %37, %46, %47 : vector<16x8xi1>, vector<16x8xf32>
    %cst_14 = arith.constant dense<0xFF800000> : vector<16xf32>
    %49 = vector.multi_reduction <maximumf>, %48, %cst_14 [1] : vector<16x8xf32> to vector<16xf32>
    %50 = vector.shape_cast %49 : vector<16xf32> to vector<16x1xf32>
    %51 = vector.broadcast %50 : vector<16x1xf32> to vector<16x8xf32>
    %52 = arith.subf %48, %51 : vector<16x8xf32>
    %53 = math.exp %52 : vector<16x8xf32>
    %cst_15 = arith.constant dense<0.000000e+00> : vector<16xf32>
    %54 = vector.multi_reduction <add>, %53, %cst_15 [1] : vector<16x8xf32> to vector<16xf32>
    %55 = vector.shape_cast %54 : vector<16xf32> to vector<16x1xf32>
    %56 = tpu.reciprocal %55 {approx = true} : vector<16x1xf32> -> vector<16x1xf32>
    %57 = vector.broadcast %56 : vector<16x1xf32> to vector<16x8xf32>
    %58 = arith.mulf %53, %57 : vector<16x8xf32>
    %59 = arith.truncf %58 : vector<16x8xf32> to vector<16x8xbf16>
    %cst_16 = arith.constant dense<0.000000e+00> : vector<16x8xf32>
    %60 = tpu.matmul %59, %41, %cst_16 {dimension_numbers = #tpu.dot_dimension_numbers<[1], [0], [0], [1], [0, 0, 1, 1], [], []>} : vector<16x8xbf16>, vector<8x8xbf16>, vector<16x8xf32> -> vector<16x8xf32>
    %61 = vector.extract_strided_slice %60 {offsets = [0, 0], sizes = [8, 8], strides = [1, 1]} : vector<16x8xf32> to vector<8x8xf32>
    %62 = vector.extract_strided_slice %60 {offsets = [8, 0], sizes = [8, 8], strides = [1, 1]} : vector<16x8xf32> to vector<8x8xf32>
    %63 = vector.extract_strided_slice %32 {offsets = [0, 8], sizes = [8, 8], strides = [1, 1]} : vector<8x16xf32> to vector<8x8xf32>
    %64 = arith.truncf %63 : vector<8x8xf32> to vector<8x8xbf16>
    %65 = vector.extract_strided_slice %33 {offsets = [0, 8], sizes = [8, 8], strides = [1, 1]} : vector<8x16xf32> to vector<8x8xf32>
    %66 = arith.truncf %65 : vector<8x8xf32> to vector<8x8xbf16>
    %67 = vector.extract_strided_slice %27 {offsets = [0, 16], sizes = [8, 8], strides = [1, 1]} : vector<8x32xf32> to vector<8x8xf32>
    %68 = vector.extract_strided_slice %27 {offsets = [0, 24], sizes = [8, 8], strides = [1, 1]} : vector<8x32xf32> to vector<8x8xf32>
    %69 = tpu.concatenate %67, %68 in 0 : vector<8x8xf32>, vector<8x8xf32> -> vector<16x8xf32>
    %70 = arith.truncf %69 : vector<16x8xf32> to vector<16x8xbf16>
    %cst_17 = arith.constant dense<0.000000e+00> : vector<16x8xf32>
    %71 = tpu.matmul %70, %64, %cst_17 {dimension_numbers = #tpu.dot_dimension_numbers<[1], [1], [0], [0], [0, 0, 1, 0], [], []>} : vector<16x8xbf16>, vector<8x8xbf16>, vector<16x8xf32> -> vector<16x8xf32>
    %cst_18 = arith.constant -1.000000e+30 : f32
    %72 = vector.broadcast %cst_18 : f32 to vector<16x8xf32>
    %73 = arith.select %37, %71, %72 : vector<16x8xi1>, vector<16x8xf32>
    %cst_19 = arith.constant dense<0xFF800000> : vector<16xf32>
    %74 = vector.multi_reduction <maximumf>, %73, %cst_19 [1] : vector<16x8xf32> to vector<16xf32>
    %75 = vector.shape_cast %74 : vector<16xf32> to vector<16x1xf32>
    %76 = vector.broadcast %75 : vector<16x1xf32> to vector<16x8xf32>
    %77 = arith.subf %73, %76 : vector<16x8xf32>
    %78 = math.exp %77 : vector<16x8xf32>
    %cst_20 = arith.constant dense<0.000000e+00> : vector<16xf32>
    %79 = vector.multi_reduction <add>, %78, %cst_20 [1] : vector<16x8xf32> to vector<16xf32>
    %80 = vector.shape_cast %79 : vector<16xf32> to vector<16x1xf32>
    %81 = tpu.reciprocal %80 {approx = true} : vector<16x1xf32> -> vector<16x1xf32>
    %82 = vector.broadcast %81 : vector<16x1xf32> to vector<16x8xf32>
    %83 = arith.mulf %78, %82 : vector<16x8xf32>
    %84 = arith.truncf %83 : vector<16x8xf32> to vector<16x8xbf16>
    %cst_21 = arith.constant dense<0.000000e+00> : vector<16x8xf32>
    %85 = tpu.matmul %84, %66, %cst_21 {dimension_numbers = #tpu.dot_dimension_numbers<[1], [0], [0], [1], [0, 0, 1, 1], [], []>} : vector<16x8xbf16>, vector<8x8xbf16>, vector<16x8xf32> -> vector<16x8xf32>
    %86 = vector.extract_strided_slice %85 {offsets = [0, 0], sizes = [8, 8], strides = [1, 1]} : vector<16x8xf32> to vector<8x8xf32>
    %87 = vector.extract_strided_slice %85 {offsets = [8, 0], sizes = [8, 8], strides = [1, 1]} : vector<16x8xf32> to vector<8x8xf32>
    %88 = tpu.concatenate %61, %62, %86, %87 in 1 : vector<8x8xf32>, vector<8x8xf32>, vector<8x8xf32>, vector<8x8xf32> -> vector<8x32xf32>
    %89 = arith.truncf %88 : vector<8x32xf32> to vector<8x32xbf16>
    %c0_22 = arith.constant 0 : index
    %c0_23 = arith.constant 0 : index
    %90 = vector.load %arg7[%c0_22, %c0_23] : memref<32x32xbf16, #tpu.memory_space<vmem>>, vector<32x32xbf16>
    %cst_24 = arith.constant dense<0.000000e+00> : vector<8x32xf32>
    %91 = tpu.matmul %89, %90, %cst_24 {dimension_numbers = #tpu.dot_dimension_numbers<[1], [0], [0], [1], [0, 0, 1, 1], [], []>} : vector<8x32xbf16>, vector<32x32xbf16>, vector<8x32xf32> -> vector<8x32xf32>
    %92 = arith.addf %0, %91 : vector<8x32xf32>
    %93 = arith.mulf %92, %92 : vector<8x32xf32>
    %cst_25 = arith.constant dense<0.000000e+00> : vector<8xf32>
    %94 = vector.multi_reduction <add>, %93, %cst_25 [1] : vector<8x32xf32> to vector<8xf32>
    %95 = vector.shape_cast %94 : vector<8xf32> to vector<8x1xf32>
    %cst_26 = arith.constant 3.200000e+01 : f32
    %96 = vector.broadcast %cst_26 : f32 to vector<8x1xf32>
    %97 = arith.divf %95, %96 : vector<8x1xf32>
    %cst_27 = arith.constant 9.99999974E-6 : f32
    %98 = vector.broadcast %cst_27 : f32 to vector<8x1xf32>
    %99 = arith.addf %97, %98 : vector<8x1xf32>
    %100 = math.rsqrt %99 : vector<8x1xf32>
    %101 = vector.broadcast %100 : vector<8x1xf32> to vector<8x32xf32>
    %102 = arith.mulf %92, %101 : vector<8x32xf32>
    %c0_28 = arith.constant 0 : index
    %c0_29 = arith.constant 0 : index
    %103 = vector.load %arg5[%c0_28, %c0_29] : memref<1x32xf32, #tpu.memory_space<vmem>>, vector<1x32xf32>
    %104 = vector.broadcast %103 : vector<1x32xf32> to vector<8x32xf32>
    %105 = arith.mulf %102, %104 : vector<8x32xf32>
    %106 = arith.truncf %105 : vector<8x32xf32> to vector<8x32xbf16>
    %c0_30 = arith.constant 0 : index
    %c0_31 = arith.constant 0 : index
    %107 = vector.load %arg8[%c0_30, %c0_31] : memref<32x128xbf16, #tpu.memory_space<vmem>>, vector<32x128xbf16>
    %cst_32 = arith.constant dense<0.000000e+00> : vector<8x128xf32>
    %108 = tpu.matmul %106, %107, %cst_32 {dimension_numbers = #tpu.dot_dimension_numbers<[1], [0], [0], [1], [0, 0, 1, 1], [], []>} : vector<8x32xbf16>, vector<32x128xbf16>, vector<8x128xf32> -> vector<8x128xf32>
    %109 = vector.extract_strided_slice %108 {offsets = [0, 0], sizes = [8, 64], strides = [1, 1]} : vector<8x128xf32> to vector<8x64xf32>
    %110 = vector.extract_strided_slice %108 {offsets = [0, 64], sizes = [8, 64], strides = [1, 1]} : vector<8x128xf32> to vector<8x64xf32>
    %111 = arith.negf %109 : vector<8x64xf32>
    %112 = math.exp %111 : vector<8x64xf32>
    %cst_33 = arith.constant 1.000000e+00 : f32
    %113 = vector.broadcast %cst_33 : f32 to vector<8x64xf32>
    %114 = arith.addf %113, %112 : vector<8x64xf32>
    %115 = arith.divf %113, %114 : vector<8x64xf32>
    %116 = arith.mulf %109, %115 : vector<8x64xf32>
    %117 = arith.mulf %116, %110 : vector<8x64xf32>
    %118 = arith.truncf %117 : vector<8x64xf32> to vector<8x64xbf16>
    %c0_34 = arith.constant 0 : index
    %c0_35 = arith.constant 0 : index
    %119 = vector.load %arg9[%c0_34, %c0_35] : memref<64x32xbf16, #tpu.memory_space<vmem>>, vector<64x32xbf16>
    %cst_36 = arith.constant dense<0.000000e+00> : vector<8x32xf32>
    %120 = tpu.matmul %118, %119, %cst_36 {dimension_numbers = #tpu.dot_dimension_numbers<[1], [0], [0], [1], [0, 0, 1, 1], [], []>} : vector<8x64xbf16>, vector<64x32xbf16>, vector<8x32xf32> -> vector<8x32xf32>
    %121 = arith.addf %92, %120 : vector<8x32xf32>
    %c0_37 = arith.constant 0 : index
    %c0_38 = arith.constant 0 : index
    %122 = vector.load %arg10[%c0_37, %c0_38] : memref<8x32xf32, #tpu.memory_space<vmem>>, vector<8x32xf32>
    tpu.vector_store %arg10[%c0_37, %c0_38], %121 {strides = array<i32>} : memref<8x32xf32, #tpu.memory_space<vmem>>, vector<8x32xf32>,
    return
  }
  func.func @transform_0(%arg0: i32) -> (i32, i32) {
    %c0_i32 = arith.constant 0 : i32
    %c0_i32_0 = arith.constant 0 : i32
    return %arg0, %c0_i32 : i32, i32
  }
  func.func @transform_1(%arg0: i32) -> (i32, i32) {
    %c0_i32 = arith.constant 0 : i32
    %c0_i32_0 = arith.constant 0 : i32
    %c0_i32_1 = arith.constant 0 : i32
    return %c0_i32, %c0_i32_0 : i32, i32
  }
  func.func @transform_2(%arg0: i32) -> (i32, i32) {
    %c0_i32 = arith.constant 0 : i32
    %c0_i32_0 = arith.constant 0 : i32
    %c0_i32_1 = arith.constant 0 : i32
    return %c0_i32, %c0_i32_0 : i32, i32
  }
  func.func @transform_3(%arg0: i32) -> (i32, i32) {
    %c0_i32 = arith.constant 0 : i32
    %c0_i32_0 = arith.constant 0 : i32
    %c0_i32_1 = arith.constant 0 : i32
    return %c0_i32, %c0_i32_0 : i32, i32
  }
  func.func @transform_4(%arg0: i32) -> (i32, i32) {
    %c0_i32 = arith.constant 0 : i32
    %c0_i32_0 = arith.constant 0 : i32
    %c0_i32_1 = arith.constant 0 : i32
    return %c0_i32, %c0_i32_0 : i32, i32
  }
  func.func @transform_5(%arg0: i32) -> (i32, i32) {
    %c0_i32 = arith.constant 0 : i32
    %c0_i32_0 = arith.constant 0 : i32
    %c0_i32_1 = arith.constant 0 : i32
    return %c0_i32, %c0_i32_0 : i32, i32
  }
  func.func @transform_6(%arg0: i32) -> (i32, i32) {
    %c0_i32 = arith.constant 0 : i32
    %c0_i32_0 = arith.constant 0 : i32
    %c0_i32_1 = arith.constant 0 : i32
    return %c0_i32, %c0_i32_0 : i32, i32
  }
  func.func @transform_7(%arg0: i32) -> (i32, i32) {
    %c0_i32 = arith.constant 0 : i32
    %c0_i32_0 = arith.constant 0 : i32
    %c0_i32_1 = arith.constant 0 : i32
    return %c0_i32, %c0_i32_0 : i32, i32
  }
  func.func @transform_8(%arg0: i32) -> (i32, i32) {
    %c0_i32 = arith.constant 0 : i32
    %c0_i32_0 = arith.constant 0 : i32
    %c0_i32_1 = arith.constant 0 : i32
    return %c0_i32, %c0_i32_0 : i32, i32
  }
  func.func @transform_9(%arg0: i32) -> (i32, i32) {
    %c0_i32 = arith.constant 0 : i32
    %c0_i32_0 = arith.constant 0 : i32
    return %arg0, %c0_i32 : i32, i32
  }
}

</mosaic_0001>

<bundles_post_ra>
// kernel: tpu_custom_call.1
= control target key start
LH: loop header
LB: loop body
LE: loop exit
PB: predicated region body
PF: predicated region fallthrough
CT: control target
= control target key end

     0   :  { %14 = vsyncpa [#allocation3], 0  ;;  %s1897_s0 = inlined_call_operand.vmem [shape: f32[16,32], index: 0, kind: input, shape index: {}]   ;;  %s1898_s1 = inlined_call_operand.hbm [shape: f32[8,8], index: 1, kind: input, shape index: {}]   ;;  %s1899_s2 = inlined_call_operand.hbm [shape: f32[8,8], index: 2, kind: input, shape index: {}]   ;;  %s1900_s3 = inlined_call_operand.vmem [shape: f32[1,32], index: 3, kind: input, shape index: {}]   ;;  %s1901_s4 = inlined_call_operand.vmem [shape: f32[1,32], index: 4, kind: input, shape index: {}]   ;;  %s1902_s5 = inlined_call_operand.vmem [shape: bf16[32,112], index: 5, kind: input, shape index: {}]   ;;  %s1903_s6 = inlined_call_operand.vmem [shape: bf16[32,32], index: 6, kind: input, shape index: {}]   ;;  %s1904_s7 = inlined_call_operand.hbm [shape: bf16[32,128], index: 7, kind: input, shape index: {}]   ;;  %s1905_s8 = inlined_call_operand.vmem [shape: bf16[64,32], index: 8, kind: input, shape index: {}]   ;;  %s1906_s9 = inlined_call_operand.hbm [shape: f32[16,32], index: 9, kind: output, shape index: {}]  }
   0x1   :  { %15 = vsyncpa [#allocation6], 0 }
   0x2   :  { %16 = vsyncpa [#allocation4], 0 }
   0x3   :  { %18 = vsyncpa [#allocation4 + $0x1], 0  ;;  %s1578_s30 = smov 0   ;;  %s1580_s10 = smov 0  }
   0x4   :  { %s1582_s11 = smov 0   ;;  %s1584_s12 = smov 0  }
   0x5 LB: > { %1913 = sst [smem:[#allocation12_spill]] %s1503_s11  ;;  %s1599_s13 = sadd.s32 4294967295, %s1507_s12   ;;  %s1507_s12 = sphi %s1584_s12, %s1928_s12   ;;  %s1503_s11 = sphi %s1582_s11, %s1930_s11   ;;  %s1499_s10 = sphi %s1580_s10, %s1932_s10   ;;  %s1495_s30 = sphi %s1578_s30, %s1931_s30  }
   0x6   : > { %s1115_s14 = sadd.s32 4294967294, %s1507_s12   ;;  %s1603_s15 = sadd.s32 1, %s1507_s12  }
   0x7   : > { %1914 = sst [smem:[#allocation13_spill]] %s1603_s15  ;;  %s225_s16 = sadd.s32 1, %s1503_s11 }
   0x8   : > { %s222_s17 = ssub.s32 %s1507_s12, %s1603_s15  ;;  %p235_p0 = scmp.ne.s32.totalorder %s1503_s11, %s1499_s10 }
   0x9   : > { %p223_p1 = scmp.eq.s32.totalorder %s222_s17, 0  ;;  %p236_p2 = scmp.eq.s32.totalorder %s1599_s13, 1 }
   0xa   : > { %p241_p3 = scmp.ne.s32.totalorder %s1499_s10, %s1495_s30  ;;  %p242_p4 = scmp.eq.s32.totalorder %s1115_s14, 1 }
   0xb   : > { %s1614_s18 = scalar_select %p223_p1, %s1503_s11, %s225_s16  }
   0xc   : > { %p1616_p5 = por %p236_p2, %p235_p0  ;;  %p1620_p6 = por %p242_p4, %p241_p3 }
   0xd   : > { %1915 = sst [smem:[#allocation14_spill]] %s1614_s18  ;;  %p1116_p7 = scmp.ge.s32.totalorder %s1507_s12, 1 }
   0xe   : > { %s1916_s19 = scalar_select %p1616_p5, 1, 0 }
   0xf   : > { %s1917_s20 = scalar_select %p1620_p6, 1, 0 }
  0x10   : > { %p249_p8 = scmp.lt.s32.totalorder %s1507_s12, 3  ;;  %p1907_p9 = scmp.eq.s32.totalorder %s1599_s13, 0 }
  0x11   : > { %s1509_s22 = smov [#allocation5]   ;;  %s1510_s24 = smov [#allocation2]  }
  0x12   : > { %p1627_p10 = pnand %p1116_p7, %p249_p8  ;;  %s273_s23 = sshll.u32 %s1509_s22, 4  ;;  %s274_s23 = int_to_ptr.vmem [resolvable:$true] %s273_s23 }
  0x13   : > { %s262_s25 = sshll.u32 %s1510_s24, 4  ;;  %s1511_s27 = smov [#allocation7]   ;;  %s1639_s25 = int_to_ptr.vmem [resolvable:$true] %s262_s25 }
  0x14   : > { %s1918_s21 = scalar_select %p1627_p10, 1, 0 }
  0x15   : > { %p1248_p11 = pneg %p1627_p10  ;;  %s295_s28 = sshll.u32 %s1511_s27, 4  ;;  %s1641_s28 = int_to_ptr.vmem [resolvable:$true] %s295_s28 }
  0x16   : > { %s1353_s16 = scalar_lea.hbm %s1899_s2, 128 }
  0x17   : > { %p1635_p12 = pnand %p1907_p9, %p1248_p11  ;;  %p1354_p13 = scmp.ne.s32.totalorder %s1899_s2, %s1353_s16 }
  0x18   : > { %p1360_p3 = scmp.lt.u32.totalorder %s1353_s16, %s1899_s2 }
  0x19   : > { %p1651_p0 = pneg %p1635_p12 }
  0x1b   : > { %p1356_p1 = pnand %p1651_p0, %p1354_p13 }
  0x1d   : > { %p1357_p2 = pneg %p1356_p1 }
  0x1f   : > { %p1362_p4 = pnand %p1360_p3, %p1357_p2 }
  0x21   : > { %1365 = shalt.err (!%p1362_p4)
}
  0x22   : > { %s1366_s29 = scalar_lea.vmem %s274_s23, 128  ;;  %p1374_p9 = scmp.lt.s32.totalorder %s274_s23, %s274_s23 }
  0x23   : > { %p1367_p7 = scmp.ne.s32.totalorder %s274_s23, %s1366_s29  ;;  %p1375_p6 = scmp.lt.s32.totalorder %s1366_s29, %s1366_s29 }
  0x25   : > { %p1369_p8 = pnand %p1367_p7, %p1651_p0  ;;  %p1376_p5 = por %p1375_p6, %p1374_p9 }
  0x27   : > { %p1370_p11 = pneg %p1369_p8 }
  0x29   : > { %p1377_p10 = pnand %p1376_p5, %p1370_p11 }
  0x2b   : > { %1380 = shalt.err (!%p1377_p10)
}
  0x2c   : > { %1254 = dma.hbm_to_vmem [thread:$0]  (!%p1635_p12), %s1899_s2, 128, %s274_s23, [#allocation6]  }
  0x2d   : > { %s1381_s22 = scalar_lea.hbm %s1898_s1, 128 }
  0x2e   : > { %p1382_p13 = scmp.ne.s32.totalorder %s1898_s1, %s1381_s22  ;;  %p1388_p5 = scmp.lt.u32.totalorder %s1381_s22, %s1898_s1 }
  0x30   : > { %p1384_p1 = pnand %p1382_p13, %p1651_p0 }
  0x32   : > { %p1385_p6 = pneg %p1384_p1 }
  0x34   : > { %p1390_p9 = pnand %p1388_p5, %p1385_p6 }
  0x36   : > { %1393 = shalt.err (!%p1390_p9)
}
  0x37   : > { %s1394_s23 = scalar_lea.vmem %s1639_s25, 128  ;;  %p1402_p4 = scmp.lt.s32.totalorder %s1639_s25, %s1639_s25 }
  0x38   : > { %p1395_p10 = scmp.ne.s32.totalorder %s1639_s25, %s1394_s23  ;;  %p1403_p7 = scmp.lt.s32.totalorder %s1394_s23, %s1394_s23 }
  0x3a   : > { %p1397_p2 = pnand %p1395_p10, %p1651_p0  ;;  %p1404_p8 = por %p1403_p7, %p1402_p4 }
  0x3c   : > { %p1398_p3 = pneg %p1397_p2 }
  0x3e   : > { %p1405_p11 = pnand %p1404_p8, %p1398_p3 }
  0x40   : > { %1408 = shalt.err (!%p1405_p11)
}
  0x41   : > { %1251 = dma.hbm_to_vmem [thread:$0]  (!%p1635_p12), %s1898_s1, 128, %s1639_s25, [#allocation3]  }
  0x42   : > { %s1409_s18 = scalar_lea.hbm %s1904_s7, 256 }
  0x43   : > { %p1410_p13 = scmp.ne.s32.totalorder %s1904_s7, %s1409_s18  ;;  %p1416_p5 = scmp.lt.u32.totalorder %s1409_s18, %s1904_s7 }
  0x45   : > { %p1412_p1 = pnand %p1410_p13, %p1651_p0 }
  0x47   : > { %p1413_p6 = pneg %p1412_p1 }
  0x49   : > { %p1418_p9 = pnand %p1416_p5, %p1413_p6 }
  0x4b   : > { %1421 = shalt.err (!%p1418_p9)
}
  0x4c   : > { %s1422_s25 = scalar_lea.vmem %s1641_s28, 256  ;;  %p1430_p4 = scmp.lt.s32.totalorder %s1641_s28, %s1641_s28 }
  0x4d   : > { %p1423_p10 = scmp.ne.s32.totalorder %s1641_s28, %s1422_s25  ;;  %p1431_p7 = scmp.lt.s32.totalorder %s1422_s25, %s1422_s25 }
  0x4f   : > { %p1425_p2 = pnand %p1423_p10, %p1651_p0  ;;  %p1432_p8 = por %p1431_p7, %p1430_p4 }
  0x51   : > { %p1426_p3 = pneg %p1425_p2 }
  0x53   : > { %p1433_p11 = pnand %p1432_p8, %p1426_p3 }
  0x55   : > { %1436 = shalt.err (!%p1433_p11)
}
  0x56   : > { %s1512_s23 = smov 64   ;;  %s1513_s11 = smov 4  }
  0x57   : > { %1257 = dma.hbm_to_vmem [thread:$0]  (!%p1635_p12), %s1904_s7, 256, %s1641_s28, [#allocation6], %s1512_s23, %s1512_s23, %s1513_s11  }
  0x58   : > { %p1921_p13 = scmp.ne.s32.totalorder %s1918_s21, 0 }
  0x59   : > { %p1922_p0 = scmp.eq.s32.totalorder (!%p1921_p13), %s1599_s13, 0 }
  0x5a   : > { %321 = sbr.rel (%p1921_p13) target bundleno = 2639 (0xa4f), region = 56 }
  0x61   : > { %1482 = dma.done.wait (%p1922_p0), [#allocation3], 128   ;;  %p1923_p1 = pmov %p1922_p0 }
  0x62   : > { %p1924_p6 = pmov %p1922_p0 }
  0x63   : > { %1484 = vsyncadd (%p1923_p1), [#allocation3], 4294967168 }
  0x64   : > { %1486 = dma.done.wait (%p1924_p6), [#allocation6], 384   ;;  %p1925_p5 = pmov %p1922_p0 }
  0x65   : > { %p364_p9 = scmp.lt.s32.totalorder %s1599_s13, 1  ;;  %vm371_vm0 = vcmask 261120   ;;  %v449_v1 = vld [vmem:[#allocation5] sm:$0xff]  ;;  %s1514_s18 = smov 16   ;;  %v1319_v4 = vld [vmem:[%s1902_s5] sm:$0xff]   ;;  %v1517_v5 = vmov 0.0   ;;  %v504_v51 = vlaneseq }
  0x66   : > { %1488 = vsyncadd (%p1925_p5), [#allocation6], 4294966912  ;;  %470 = vrot.lane.b32.xlu1 %v449_v1, %s1514_s18  ;;  %s1515_s16 = smov 24   ;;  %s1516_s22 = smov 8   ;;  %1174 = vmatprep.subr.bf16.mxu0 %v1517_v5  ;;  %v1320_v6 = vld [vmem:[%s1902_s5 + $0x8] sm:$0xff]   ;;  %vm1518_vm1 = vmmov 0  }
  0x67   : > { %s365_s26 = scalar_select %p364_p9, %s1599_s13, 1  ;;  %1182 = vmatprep.subr.bf16.mxu1 %v1517_v5  ;;  %1175 = vmatpush3.bf16.msra.mxu0 %v1319_v4  ;;  %vm460_vm2 = vcmask 64512   ;;  %vm462_vm3 = vcmask 130048   ;;  %vm464_vm4 = vcmask 195584   ;;  %v448_v16 = vld [vmem:[#allocation2] sm:$0xff]  ;;  %v505_v52 = vshrl.u32 %v504_v51, 7 }
  0x68   : > { %1176 = vmatprep.subr.bf16.mxu0 %v1517_v5  ;;  %1178 = vmatprep.mubr.msk.bf16.mxu0 %vm1518_vm1, %v1517_v5  ;;  %s1519_s11 = smov 64   ;;  %v1127_v18 = vld [vmem:[%s1900_s3] ss:$0 sm:$0xff]  ;;  %s1522_s24 = smov 120   ;;  %v507_v53 = vand.u32 127, %v504_v51  ;;  %vm597_vm6 = vcmask 1043456  }
  0x69   : > { %s1126_s28 = sshll.u32 %s365_s26, 3  ;;  %1184 = vmatprep.mubr.msk.bf16.mxu1 %vm1518_vm1, %v1517_v5  ;;  %s1520_s26 = smov 96   ;;  %vm965_vm7 = vcmask 523264  }
  0x6a   : > { %s367_s17 = scalar_lea.vmem %s1897_s0, %s1126_s28  ;;  %473 = vrot.lane.b32.xlu1 %v449_v1, %s1515_s16  ;;  %s1521_s28 = smov 32   ;;  %vm508_vm5 = vcmp.le.s32.totalorder %v507_v53, %v505_v52 }
  0x6b   : > { %v1728_v0 = vld [vmem:[%s367_s17] sm:$0xff]  ;;  %1177 = vmatpush3.bf16.msra.mxu0 %v1320_v6  ;;  %s1523_s21 = smov 88   ;;  %s1524_s17 = smov 112  }
  0x6c   : > { %v370_v2 = vmul.f32 %v1728_v0, %v1728_v0  ;;  %1188 = vmatprep.subr.bf16.mxu0 %v1517_v5  ;;  %s1525_s27 = smov 72   ;;  %s1526_s29 = smov 80  }
  0x6d   : > { %s361_s25 = sand.u32 1, %s1499_s10   ;;  %s1149_s23 = sshll.u32 %s1599_s13, 7 }
  0x6e   : > { %v372_v3 = vsel %vm371_vm0, %v370_v2, 0.0  ;;  %s1012_s13 = scalar_lea.sflag [#allocation4], %s361_s25  ;;  %p1926_p10 = scmp.ne.s32.totalorder %s1916_s19, 0 }
  0x6f   : > { %373 = vadd.xlane.f32.xlu0 %v372_v3 }
  0x85   : > { %467 = vrot.lane.b32.xlu0 %v449_v1, %s1516_s22 }
  0xd8   : > { %v471_v7 = vpop.permute.xlu1 %470 }
  0xdc   : > { %v474_v12 = vpop.permute.xlu1 %473 }
  0xfc   : > { %v374_v8 = vpop.xlane.xlu0 %373 }
  0xfd   : > { %v376_v9 = vmul.f32 0.03125, %v374_v8 }
  0xff   : > { %v377_v10 = vadd.f32 1e-05, %v376_v9 }
 0x100   : > { %v468_v11 = vpop.permute.xlu0 %467 }
 0x101   : > { %1329 = vrsqrt.f32 %v377_v10  ;;  %v476_v13 = vsel %vm460_vm2, %v449_v1, %v468_v11 }
 0x102   : > { %v477_v14 = vsel %vm462_vm3, %v476_v13, %v471_v7 }
 0x103   : > { %v478_v15 = vsel %vm464_vm4, %v477_v14, %v474_v12 }
 0x104   : > { %481 = vrot.lane.b32.xlu1 %v478_v15, %s1519_s11 }
 0x108   : > { %451 = vrot.lane.b32.xlu1 %v448_v16, %s1516_s22 }
 0x10b   : > { %v1330_v17 = vpop.eup %1329 }
 0x10c   : > { %454 = vrot.lane.b32.xlu1 %v448_v16, %s1514_s18  ;;  %v379_v19 = vmul.f32 %v1330_v17, %v1728_v0 }
 0x10e   : > { %v387_v20 = vmul.f32 %v1127_v18, %v379_v19 }
 0x110   : > { %457 = vrot.lane.b32.xlu1 %v448_v16, %s1515_s16  ;;  %v388_v21 = vpack.c.bf16 %v387_v20, %v387_v20 }
 0x112   : > { %1179 = vmatmul.mubr.msk.bf16.vlgmr.msra.gmra.mrb[0].mxu0 %vm371_vm0, %v388_v21 }
 0x113   : > { %1190 = vmatprep.mubr.msk.bf16.mxu0 %vm1518_vm1, %v1517_v5 }
 0x114   : > { %495 = vrot.lane.b32.xlu1 %v478_v15, %s1520_s26 }
 0x176   : > { %v482_v22 = vpop.permute.xlu1 %481 }
 0x17a   : > { %v452_v23 = vpop.permute.xlu1 %451 }
 0x17b   : > { %v461_v24 = vsel %vm460_vm2, %v448_v16, %v452_v23 }
 0x17e   : > { %v455_v25 = vpop.permute.xlu1 %454 }
 0x17f   : > { %v463_v26 = vsel %vm462_vm3, %v461_v24, %v455_v25 }
 0x182   : > { %v458_v27 = vpop.permute.xlu1 %457 }
 0x183   : > { %v465_v28 = vsel %vm464_vm4, %v463_v26, %v458_v27 }
 0x184   : > { %491 = vrot.lane.b32.xlu1 %v465_v28, %s1521_s28  ;;  %s1527_s28 = smov [#allocation8]  }
 0x186   : > { %v496_v34 = vpop.permute.xlu1 %495 }
 0x1e5   : > { %v1768_v29 = vpop.f32.mrb[0].mxu0 }
 0x1e6   : > { %v1180_v30 = vpop.f32.mrb[1].mxu0  ;;  %v484_v31 = vmul.f32 %v482_v22, %v1768_v29  ;;  %v498_v35 = vmul.f32 %v496_v34, %v1768_v29  ;;  %v479_v36 = vmul.f32 %v465_v28, %v1768_v29  ;;  %v510_v28 = vpack.c.bf16 %v1768_v29, %v1768_v29 }
 0x1e7   : > { %v445_v32 = vpop.f32.mrb[2].mxu0 }
 0x1e8   : > { %v1181_v33 = vpop.f32.mrb[3].mxu0  ;;  %486 = vrot.lane.b32.xlu0 %v484_v31, %s1519_s11 }
 0x1ec   : > { %500 = vrot.lane.b32.xlu0 %v498_v35, %s1519_s11 }
 0x1f6   : > { %v492_v37 = vpop.permute.xlu1 %491 }
 0x1f7   : > { %v494_v40 = vmul.f32 %v492_v37, %v1768_v29 }
 0x25a   : > { %v487_v38 = vpop.permute.xlu0 %486 }
 0x25b   : > { %v489_v39 = vadd.f32 %v487_v38, %v479_v36 }
 0x25d   : > { %512 = vrot.lane.b32.xlu1 %v489_v39, %s1522_s24  ;;  %s1441_s24 = sshll.u32 %s1527_s28, 4  ;;  %s1442_s24 = int_to_ptr.vmem [resolvable:$false] %s1441_s24 }
 0x25e   : > { %v501_v41 = vpop.permute.xlu0 %500 }
 0x25f   : > { %v503_v42 = vadd.f32 %v501_v41, %v494_v40 }
 0x261   : > { %v509_v43 = vpack.c.bf16 %v503_v42, %v503_v42 }
 0x263   : > { %645 = vrot.lane.b32.xlu1 %v509_v43, %s1523_s21  ;;  %517 = vrot.lane.b32.xlu0 %v509_v43, %s1520_s26  ;;  %s1443_s21 = scalar_lea.vmem %s1442_s24, 256 }
 0x2cf   : > { %v513_v44 = vpop.permute.xlu1 %512 }
 0x2d0   : > { %v515_v45 = vpack.c.bf16 %v513_v44, %v489_v39 }
 0x2d2   : > { %643 = vrot.lane.b32.xlu0 %v515_v45, %s1524_s17 }
 0x2d5   : > { %v518_v46 = vpop.permute.xlu0 %517  ;;  %v646_v48 = vpop.permute.xlu1 %645 }
 0x2d6   : > { %v523_v47 = vsel %vm460_vm2, %v518_v46, 0  ;;  %v651_v49 = vsel %vm460_vm2, %v646_v48, 0  ;;  %v1322_v48 = vld [vmem:[%s1903_s6 + $0x8] sm:$0xff]  }
 0x2d7   : > { %1183 = vmatpush3.bf16.xpose.msra.mxu1 %v523_v47  ;;  %v1321_v47 = vld [vmem:[%s1903_s6] sm:$0xff]  }
 0x2d8   : > { %1194 = vmatprep.subr.bf16.mxu1 %v1517_v5 }
 0x2de   : > { %1185 = vmatmul.mubr.msk.bf16.vlgmr.msra.gmra.mrb[0].mxu1 %vm460_vm2, %v515_v45 }
 0x2df   : > { %1195 = vmatpush3.bf16.xpose.msra.mxu1 %v651_v49  ;;  %1196 = vmatprep.mubr.msk.bf16.mxu1 %vm1518_vm1, %v1517_v5 }
 0x2e0   : > { %1206 = vmatprep.subr.bf16.mxu1 %v1517_v5 }
 0x344   : > { %v644_v50 = vpop.permute.xlu0 %643 }
 0x345   : > { %1197 = vmatmul.mubr.msk.bf16.vlgmr.msra.gmra.mrb[4].mxu1 %vm460_vm2, %v644_v50 }
 0x346   : > { %1210 = vmatprep.mubr.msk.bf16.mxu1 %vm1518_vm1, %v1517_v5  ;;  %1207 = vmatpush3.bf16.msra.mxu1 %v1321_v47 }
 0x347   : > { %1208 = vmatprep.subr.bf16.mxu1 %v1517_v5 }
 0x34a   : > { %1209 = vmatpush3.bf16.msra.mxu1 %v1322_v48 }
 0x34b   : > { %1222 = vmatprep.subr.bf16.mxu1 %v1517_v5 }
 0x3b1   : > { %v559_v54 = vpop.f32.mrb[0].mxu1 }
 0x3b2   : > { %v566_v55 = vsel %vm508_vm5, %v559_v54, -1e+30  ;;  %v1186_v56 = vpop.f32.mrb[1].mxu1 }
 0x3b3   : > { %v562_v57 = vpop.f32.mrb[2].mxu1  ;;  %v568_v58 = vsel %vm460_vm2, %v566_v55, -inf }
 0x3b4   : > { %v567_v59 = vsel %vm508_vm5, %v562_v57, -1e+30  ;;  %569 = vmax.xlane.f32.xlu1 %v568_v58  ;;  %v1187_v60 = vpop.f32.mrb[3].mxu1 }
 0x3b5   : > { %v571_v61 = vsel %vm460_vm2, %v567_v59, -inf }
 0x3b6   : > { %572 = vmax.xlane.f32.xlu0 %v571_v61 }
 0x418   : > { %v687_v62 = vpop.f32.mrb[4].mxu1 }
 0x419   : > { %v694_v63 = vsel %vm508_vm5, %v687_v62, -1e+30  ;;  %v1198_v1 = vpop.f32.mrb[5].mxu1 }
 0x41a   : > { %v690_v2 = vpop.f32.mrb[6].mxu1  ;;  %v696_v3 = vsel %vm460_vm2, %v694_v63, -inf }
 0x41b   : > { %v695_v4 = vsel %vm508_vm5, %v690_v2, -1e+30  ;;  %697 = vmax.xlane.f32.xlu0 %v696_v3  ;;  %v1199_v6 = vpop.f32.mrb[7].mxu1 }
 0x41c   : > { %v699_v7 = vsel %vm460_vm2, %v695_v4, -inf }
 0x41d   : > { %700 = vmax.xlane.f32.xlu1 %v699_v7 }
 0x441   : > { %v570_v8 = vpop.xlane.xlu1 %569 }
 0x442   : > { %v574_v9 = vsub.f32 %v566_v55, %v570_v8 }
 0x443   : > { %v573_v10 = vpop.xlane.xlu0 %572 }
 0x444   : > { %v576_v11 = vmul.f32 1.442695, %v574_v9  ;;  %v575_v12 = vsub.f32 %v567_v59, %v573_v10  ;;  %v1323_v9 = vld [vmem:[#allocation7] sm:$0xff]   ;;  %v1324_v10 = vld [vmem:[#allocation7 + $0x8] sm:$0xff]  }
 0x446   : > { %1331 = vpow2.f32 %v576_v11  ;;  %v578_v13 = vmul.f32 1.442695, %v575_v12 }
 0x448   : > { %1333 = vpow2.f32 %v578_v13 }
 0x450   : > { %v1332_v14 = vpop.eup %1331 }
 0x451   : > { %v580_v15 = vsel %vm460_vm2, %v1332_v14, 0.0 }
 0x452   : > { %v1334_v16 = vpop.eup %1333  ;;  %581 = vadd.xlane.f32.xlu0 %v580_v15 }
 0x453   : > { %v583_v17 = vsel %vm460_vm2, %v1334_v16, 0.0 }
 0x454   : > { %584 = vadd.xlane.f32.xlu1 %v583_v17 }
 0x4a8   : > { %v698_v18 = vpop.xlane.xlu0 %697 }
 0x4a9   : > { %v702_v19 = vsub.f32 %v694_v63, %v698_v18  ;;  %v1325_v18 = vld [vmem:[%s1905_s8] sm:$0xff]  }
 0x4aa   : > { %v701_v20 = vpop.xlane.xlu1 %700 }
 0x4ab   : > { %v704_v21 = vmul.f32 1.442695, %v702_v19  ;;  %v703_v22 = vsub.f32 %v695_v4, %v701_v20  ;;  %v1326_v19 = vld [vmem:[%s1905_s8 + $0x8] sm:$0xff]   ;;  %v1327_v20 = vld [vmem:[%s1905_s8 + $0x10] sm:$0xff]  }
 0x4ad   : > { %1335 = vpow2.f32 %v704_v21  ;;  %v706_v23 = vmul.f32 1.442695, %v703_v22  ;;  %v1328_v21 = vld [vmem:[%s1905_s8 + $0x18] sm:$0xff]  }
 0x4af   : > { %1337 = vpow2.f32 %v706_v23 }
 0x4b7   : > { %v1336_v24 = vpop.eup %1335 }
 0x4b8   : > { %v708_v25 = vsel %vm460_vm2, %v1336_v24, 0.0 }
 0x4b9   : > { %v1338_v26 = vpop.eup %1337  ;;  %709 = vadd.xlane.f32.xlu0 %v708_v25 }
 0x4ba   : > { %v711_v27 = vsel %vm460_vm2, %v1338_v26, 0.0 }
 0x4bb   : > { %712 = vadd.xlane.f32.xlu1 %v711_v27 }
 0x4cc   : > { %719 = vrot.lane.b32.xlu1 %v510_v28, %s1525_s27 }
 0x4cf   : > { %592 = vrot.lane.b32.xlu0 %v510_v28, %s1526_s29 }
 0x4df   : > { %v582_v31 = vpop.xlane.xlu0 %581 }
 0x4e1   : > { %v585_v30 = vpop.xlane.xlu1 %584 }
 0x4e2   : > { %1339 = vrcp.f32 %v585_v30 }
 0x4e3   : > { %1341 = vrcp.f32 %v582_v31 }
 0x4ec   : > { %v1340_v32 = vpop.eup %1339 }
 0x4ed   : > { %v1342_v34 = vpop.eup %1341  ;;  %v589_v36 = vmul.f32 %v1340_v32, %v1334_v16 }
 0x4ee   : > { %v588_v38 = vmul.f32 %v1342_v34, %v1332_v14 }
 0x4f0   : > { %v590_v40 = vpack.c.bf16 %v589_v36, %v588_v38 }
 0x546   : > { %v710_v33 = vpop.xlane.xlu0 %709 }
 0x547   : > { %1343 = vrcp.f32 %v710_v33 }
 0x548   : > { %v713_v35 = vpop.xlane.xlu1 %712 }
 0x549   : > { %1345 = vrcp.f32 %v713_v35 }
 0x54a   : > { %v593_v37 = vpop.permute.xlu0 %592 }
 0x54b   : > { %v599_v39 = vsel %vm597_vm6, %v593_v37, 0 }
 0x54c   : > { %1189 = vmatpush3.bf16.msra.mxu0 %v599_v39  ;;  %v720_v29 = vpop.permute.xlu1 %719 }
 0x54d   : > { %1200 = vmatprep.subr.bf16.mxu0 %v1517_v5  ;;  %v725_v41 = vsel %vm597_vm6, %v720_v29, 0 }
 0x54f   : > { %1191 = vmatmul.mubr.msk.bf16.vlgmr.msra.gmra.mrb[4].mxu0 %vm460_vm2, %v590_v40 }
 0x550   : > { %1201 = vmatpush3.bf16.msra.mxu0 %v725_v41  ;;  %1202 = vmatprep.mubr.msk.bf16.mxu0 %vm1518_vm1, %v1517_v5 }
 0x551   : > { %v1344_v42 = vpop.eup %1343  ;;  %1214 = vmatprep.subr.bf16.mxu0 %v1517_v5 }
 0x552   : > { %v716_v44 = vmul.f32 %v1344_v42, %v1336_v24 }
 0x553   : > { %v1346_v43 = vpop.eup %1345 }
 0x554   : > { %v717_v45 = vmul.f32 %v1346_v43, %v1338_v26 }
 0x556   : > { %v718_v46 = vpack.c.bf16 %v717_v45, %v716_v44 }
 0x558   : > { %1203 = vmatmul.mubr.msk.bf16.vlgmr.msra.gmra.mrb[8].mxu0 %vm460_vm2, %v718_v46 }
 0x559   : > { %1218 = vmatprep.mubr.msk.bf16.mxu0 %vm1518_vm1, %v1517_v5  ;;  %1215 = vmatpush3.bf16.msra.mxu0 %v1323_v9 }
 0x55a   : > { %1216 = vmatprep.subr.bf16.mxu0 %v1517_v5 }
 0x55d   : > { %1217 = vmatpush3.bf16.msra.mxu0 %v1324_v10 }
 0x622   : > { %v635_v49 = vpop.f32.mrb[4].mxu0 }
 0x623   : > { %v1192_v50 = vpop.f32.mrb[5].mxu0 }
 0x624   : > { %v638_v51 = vpop.f32.mrb[6].mxu0 }
 0x625   : > { %769 = vrot.lane.b32.xlu1 %v638_v51, %s1516_s22  ;;  %v1193_v52 = vpop.f32.mrb[7].mxu0  ;;  %s1854_s22 = scalar_lea.hbm %s1906_s9, %s1149_s23 }
 0x62b   : > { %v761_v53 = vpop.f32.mrb[8].mxu0 }
 0x62c   : > { %773 = vrot.lane.b32.xlu0 %v761_v53, %s1514_s18  ;;  %v1204_v54 = vpop.f32.mrb[9].mxu0 }
 0x62d   : > { %v764_v55 = vpop.f32.mrb[10].mxu0 }
 0x62e   : > { %777 = vrot.lane.b32.xlu1 %v764_v55, %s1515_s16  ;;  %v1205_v56 = vpop.f32.mrb[11].mxu0 }
 0x697   : > { %v770_v57 = vpop.permute.xlu1 %769 }
 0x698   : > { %v780_v58 = vsel %vm460_vm2, %v635_v49, %v770_v57 }
 0x69e   : > { %v774_v59 = vpop.permute.xlu0 %773 }
 0x69f   : > { %v781_v60 = vsel %vm462_vm3, %v780_v58, %v774_v59 }
 0x6a0   : > { %v778_v61 = vpop.permute.xlu1 %777 }
 0x6a1   : > { %v782_v62 = vsel %vm464_vm4, %v781_v60, %v778_v61 }
 0x6a2   : > { %v783_v63 = vpack.c.bf16 %v782_v62, %v782_v62 }
 0x6a4   : > { %1211 = vmatmul.mubr.msk.bf16.vlgmr.msra.gmra.mrb[8].mxu1 %vm371_vm0, %v783_v63 }
 0x6a5   : > { %1230 = vmatprep.mubr.msk.bf16.mxu1 %vm1518_vm1, %v1517_v5  ;;  %1223 = vmatpush3.bf16.msra.mxu1 %v1325_v18 }
 0x6a6   : > { %1224 = vmatprep.subr.bf16.mxu1 %v1517_v5 }
 0x6a9   : > { %1225 = vmatpush3.bf16.msra.mxu1 %v1326_v19 }
 0x6aa   : > { %1226 = vmatprep.subr.bf16.mxu1 %v1517_v5 }
 0x6ad   : > { %1227 = vmatpush3.bf16.msra.mxu1 %v1327_v20 }
 0x6ae   : > { %1228 = vmatprep.subr.bf16.mxu1 %v1517_v5 }
 0x6b1   : > { %1229 = vmatpush3.bf16.msra.mxu1 %v1328_v21 }
 0x777   : > { %v837_v1 = vpop.f32.mrb[8].mxu1 }
 0x778   : > { %v843_v2 = vadd.f32 %v837_v1, %v1728_v0  ;;  %v1212_v3 = vpop.f32.mrb[9].mxu1  ;;  %v1138_v0 = vld [vmem:[%s1901_s4] ss:$0 sm:$0xff] }
 0x779   : > { %v840_v4 = vpop.f32.mrb[10].mxu1 }
 0x77a   : > { %v1213_v6 = vpop.f32.mrb[11].mxu1  ;;  %v844_v7 = vmul.f32 %v843_v2, %v843_v2 }
 0x77c   : > { %v845_v8 = vsel %vm371_vm0, %v844_v7, 0.0 }
 0x77d   : > { %846 = vadd.xlane.f32.xlu0 %v845_v8 }
 0x80a   : > { %v847_v11 = vpop.xlane.xlu0 %846 }
 0x80b   : > { %v848_v12 = vmul.f32 0.03125, %v847_v11 }
 0x80d   : > { %v849_v13 = vadd.f32 1e-05, %v848_v12 }
 0x80f   : > { %1347 = vrsqrt.f32 %v849_v13 }
 0x819   : > { %v1348_v14 = vpop.eup %1347 }
 0x81a   : > { %v851_v15 = vmul.f32 %v1348_v14, %v843_v2 }
 0x81c   : > { %v859_v16 = vmul.f32 %v1138_v0, %v851_v15 }
 0x81e   : > { %v860_v17 = vpack.c.bf16 %v859_v16, %v859_v16 }
 0x820   : > { %1219 = vmatmul.mubr.msk.bf16.vlgmr.msra.gmra.mrb[12].mxu0 %vm371_vm0, %v860_v17 }
 0x8f3   : > { %v914_v22 = vpop.f32.mrb[12].mxu0 }
 0x8f4   : > { %928 = vrot.lane.b32.xlu1 %v914_v22, %s1519_s11  ;;  %v1220_v23 = vpop.f32.mrb[13].mxu0  ;;  %v1142_v26 = vmul.f32 -1.442695, %v914_v22  ;;  %s1125_s11 = sshll.u32 %s361_s25, 3 }
 0x8f5   : > { %v917_v24 = vpop.f32.mrb[14].mxu0  ;;  %s363_s15 = scalar_lea.vmem [#allocation8], %s1125_s11 }
 0x8f6   : > { %v1221_v25 = vpop.f32.mrb[15].mxu0  ;;  %1349 = vpow2.f32 %v1142_v26  ;;  %s1025_s14 = sshll.u32 %s363_s15, 4  ;;  %s1856_s14 = int_to_ptr.vmem [resolvable:$true] %s1025_s14 }
 0x8f7   : > { %s1437_s26 = scalar_lea.vmem %s1856_s14, 128  ;;  %p1444_p4 = scmp.lt.s32.totalorder %s1856_s14, %s1442_s24 }
 0x8f8   : > { %p1438_p12 = scmp.ne.s32.totalorder %s1856_s14, %s1437_s26  ;;  %p1445_p7 = scmp.lt.s32.totalorder %s1443_s21, %s1437_s26 }
 0x8fa   : > { %p1439_p2 = pnand %p1438_p12, %p1926_p10  ;;  %p1446_p8 = por %p1445_p7, %p1444_p4 }
 0x8fc   : > { %p1440_p3 = pneg %p1439_p2 }
 0x8fe   : > { %p1447_p11 = pnand %p1446_p8, %p1440_p3 }
 0x900   : > { %v1350_v27 = vpop.eup %1349 }
 0x901   : > { %v923_v28 = vadd.f32 1.0, %v1350_v27 }
 0x903   : > { %1351 = vrcp.f32 %v923_v28 }
 0x90d   : > { %v1352_v30 = vpop.eup %1351 }
 0x90e   : > { %v926_v5 = vmul.f32 %v1352_v30, %v914_v22 }
 0x966   : > { %v929_v31 = vpop.permute.xlu1 %928 }
 0x967   : > { %v931_v32 = vmul.f32 %v929_v31, %v926_v5 }
 0x969   : > { %v932_v33 = vpack.c.bf16 %v931_v32, %v931_v32 }
 0x96b   : > { %1231 = vmatmul.mubr.msk.bf16.vlgmr.msra.gmra.mrb[12].mxu1 %vm965_vm7, %v932_v33 }
 0xa3e   : > { %v1003_v34 = vpop.f32.mrb[12].mxu1 }
 0xa3f   : > { %v1009_v35 = vadd.f32 %v1003_v34, %v843_v2  ;;  %v1232_v36 = vpop.f32.mrb[13].mxu1 }
 0xa40   : > { %v1006_v37 = vpop.f32.mrb[14].mxu1 }
 0xa41   : > { %v1233_v38 = vpop.f32.mrb[15].mxu1  ;;  %1010 = vst.msk [vmem:[%s363_s15] sm:$0xff] %vm371_vm0, %v1009_v35 }
 0xa42   : > { %1450 = shalt.err (!%p1447_p11)
}
 0xa43   : > { %s1451_s17 = scalar_lea.hbm %s1854_s22, 128  ;;  %s1455_s25 = scalar_lea.hbm %s1906_s9, 256 }
 0xa44   : > { %p1452_p13 = scmp.ne.s32.totalorder %s1854_s22, %s1451_s17  ;;  %p1456_p6 = scmp.lt.u32.totalorder %s1854_s22, %s1906_s9 }
 0xa45   : > { %p1457_p5 = scmp.lt.u32.totalorder %s1455_s25, %s1451_s17  ;;  %p1459_p12 = scmp.lt.u32.totalorder %s1451_s17, %s1854_s22 }
 0xa46   : > { %p1453_p0 = pnand %p1452_p13, %p1926_p10 }
 0xa47   : > { %p1458_p9 = por %p1457_p5, %p1456_p6 }
 0xa48   : > { %p1454_p1 = pneg %p1453_p0 }
 0xa49   : > { %p1460_p2 = por %p1459_p12, %p1458_p9 }
 0xa4b   : > { %p1461_p3 = pnand %p1460_p2, %p1454_p1 }
 0xa4d   : > { %1464 = shalt.err (!%p1461_p3)
}
 0xa4e   : > { %1246 = dma.vmem_to_hbm [thread:$0]  (%p1926_p10), %s1856_s14, 128, %s1854_s22, %s1012_s13  }
 0xa4f PF: > { %p1268_p4 = scmp.ge.s32.totalorder %s1507_s12, 2  ;;  %s1037_s15 = sand.u32 1, %s1495_s30  }
 0xa50   : > { %p1927_p7 = scmp.ne.s32.totalorder %s1917_s20, 0  ;;  %s1038_s18 = scalar_lea.sflag [#allocation4], %s1037_s15 }
 0xa52   : > { %p1259_p8 = pnand %p1268_p4, %p1927_p7 }
 0xa54   : > { %1490 = dma.done.wait (!%p1259_p8), %s1038_s18, 128  }
 0xa55   : > { %1492 = vsyncadd (!%p1259_p8), %s1038_s18, 4294967168  ;;  %s1928_s12 = sld [smem:[#allocation13_spill]]  ;;  %s1929_s16 = sld [smem:[#allocation12_spill]] }
 0xa56   : > { %s1930_s11 = sld [smem:[#allocation14_spill]]  ;;  %s1931_s30 = smov %s1499_s10 }
 0xa5b   : > { %p21_p11 = scmp.ge.s32.totalorder %s1928_s12, 4   ;;  %s1932_s10 = smov %s1929_s16 }
 0xa5d   :  { %23 = sbr.rel (!%p21_p11) target bundleno = 5 (0x5), region = 104 }
 0xa64   :  { %1043 = vsyncpa [#allocation3], 1 }
 0xa65   :  { %1045 = vsyncpa [#allocation3 + $0x1], 1 }
 0xa66   :  { %1046 = vsyncpa [#allocation6], 1 }
 0xa67   :  { %1047 = vsyncpa [#allocation4], 1 }
 0xa68   :  { %1049 = vsyncpa [#allocation4 + $0x1], 1 }

</bundles_post_ra>
